<compile_context>
chip_gen: v5e
topology: v5e:2x2
jax: 0.10.0
libtpu: 0.0.40
codegen_flags: <defaults>
</compile_context>

<pallas_src>
import functools

import jax
import jax.numpy as jnp
from jax.experimental import pallas as pl
from jax.experimental.pallas import tpu as pltpu


LANE = 128      # vreg lane count  -> last-dim alignment unit
SUBLANE = 8     # f32 sublane count -> second-to-last alignment unit (x4/dtype)


def _round_up(n, m):
    return ((n + m - 1) // m) * m


def _pad_to(arr, shape):
    pads = [(0, s - d) for d, s in zip(arr.shape, shape)]
    if all(p == (0, 0) for p in pads):
        return arr
    return jnp.pad(arr, pads)


# ----------------------------------------------------------------------------
# Tile / budget selection helpers (all pure Python, run once at init time)
# ----------------------------------------------------------------------------
def _vmem_budget_bytes():
    """~3/4 of physical per-core VMEM (v7x: 64 MiB -> 48; v5e/v6e: 128 -> 96)."""
    cap = 64 * 1024 * 1024
    try:
        info = pltpu.get_tpu_info()
        cap = int(getattr(info, "vmem_capacity_bytes", cap))
    except Exception:
        pass
    return max(32 * 1024 * 1024, (cap * 3) // 4)


def _pick_tile(dim_pad, cap):
    """Largest multiple of 128 that is <= cap and divides dim_pad."""
    t = max(LANE, (min(cap, dim_pad) // LANE) * LANE)
    while dim_pad % t:
        t -= LANE
    return t


def _pick_tm(batch, cap, sub):
    """Batch tile: largest tile whose padding overhead stays <= ~12%."""
    b_sub = _round_up(batch, sub)
    if b_sub <= cap:
        return b_sub
    for cand in (512, 256, 128, 64, 32, 16):
        if sub <= cand <= cap and cand % sub == 0:
            if _round_up(b_sub, cand) * 8 <= b_sub * 9:   # <= 12.5% padding
                return cand
    return sub   # minimal-padding fallback (b_sub is a multiple of sub)


def _select_tiles(in_pad, h_pad, out_pad, itemsize, budget,
                  tm_cap, tn_cap, tk_cap):
    """Pick (tm_cap, tn, tk) so the estimated VMEM footprint fits the budget."""
    tn = _pick_tile(out_pad, tn_cap)
    tk = _pick_tile(h_pad, tk_cap)

    def est(tm_, tn_, tk_):
        return (2 * (tm_ * in_pad + in_pad * tk_ + tk_ * tn_) * itemsize  # dbl-buf inputs
                + (h_pad + out_pad) * 4                                   # f32 biases
                + 3 * tm_ * tn_ * 4                                       # out dbl-buf + acc
                + tm_ * h_pad * itemsize)                                 # layer-1 cache

    while tk > LANE and est(tm_cap, tn, tk) > budget:
        tk = _pick_tile(h_pad, tk - LANE)
    while tm_cap > 16 and est(tm_cap, tn, tk) > budget:
        tm_cap //= 2
    return tm_cap, tn, tk


# ----------------------------------------------------------------------------
# Pallas kernel: fused, tiled Linear -> ReLU -> Linear with layer-1 caching
# ----------------------------------------------------------------------------
def _mlp_fused_kernel(x_ref, w1t_ref, b1_ref, w2t_ref, b2_ref, o_ref,
                      acc_ref, h_ref):
    # x:   (tm, IN_pad)     w1t: (IN_pad, tk)   b1: (1, tk) f32
    # w2t: (tk, tn)         b2:  (1, tn)  f32   o:  (tm, tn)
    # acc: (tm, tn) f32     h_ref: (H_pad/tk, tm, tk) compute dtype
    j = pl.program_id(1)
    k = pl.program_id(2)

    @pl.when(k == 0)
    def _():
        acc_ref[...] = jnp.zeros_like(acc_ref)

    # Layer-1 producer (x @ W1.T + b1, ReLU) for this hidden tile: computed
    # once per batch tile (j == 0) and cached in VMEM for all output-N tiles.
    @pl.when(j == 0)
    def _():
        h = jnp.dot(x_ref[...], w1t_ref[...],
                    preferred_element_type=jnp.float32)
        h_ref[k] = jnp.maximum(h + b1_ref[...], 0.0).astype(h_ref.dtype)

    # Layer-2 partial contraction over this hidden tile (f32 MXU accumulate).
    acc_ref[...] += jnp.dot(h_ref[k], w2t_ref[...],
                            preferred_element_type=jnp.float32)

    @pl.when(k == pl.num_programs(2) - 1)
    def _():
        o_ref[...] = (acc_ref[...] + b2_ref[...]).astype(o_ref.dtype)


def _fused_mlp_pallas(x_pad, w1t, b1r, w2t, b2r, *, tm, tn, tk, out_dtype,
                      vmem_limit):
    """pallas_call on already padded, kernel-layout operands."""
    b_pad, in_pad = x_pad.shape
    h_pad, out_pad = w2t.shape
    nk = h_pad // tk
    grid = (b_pad // tm, out_pad // tn, nk)
    cdt = x_pad.dtype

    # Advisory cost estimate: layer-1 now runs exactly once per batch tile.
    flops = 2 * b_pad * in_pad * h_pad + 2 * b_pad * h_pad * out_pad
    bytes_accessed = (sum(int(a.size) * a.dtype.itemsize
                          for a in (x_pad, w1t, b1r, w2t, b2r))
                      + b_pad * out_pad * jnp.dtype(out_dtype).itemsize)

    return pl.pallas_call(
        _mlp_fused_kernel,
        out_shape=jax.ShapeDtypeStruct((b_pad, out_pad), out_dtype),
        grid_spec=pltpu.PrefetchScalarGridSpec(
            num_scalar_prefetch=0,
            grid=grid,
            in_specs=[
                pl.BlockSpec((tm, in_pad), lambda i, j, k: (i, 0)),
                # Layer-1 weight / bias tiles are only needed while filling the
                # cache (j == 0); for j > 0 the index collapses to block 0 so
                # the pipeline skips the (unchanged-block) DMA.
                pl.BlockSpec((in_pad, tk),
                             lambda i, j, k: (0, jnp.where(j == 0, k, 0))),
                pl.BlockSpec((1, tk),
                             lambda i, j, k: (0, jnp.where(j == 0, k, 0))),
                pl.BlockSpec((tk, tn), lambda i, j, k: (k, j)),
                pl.BlockSpec((1, tn), lambda i, j, k: (0, j)),
            ],
            out_specs=pl.BlockSpec((tm, tn), lambda i, j, k: (i, j)),
            scratch_shapes=[
                pltpu.VMEM((tm, tn), jnp.float32),   # layer-2 accumulator
                pltpu.VMEM((nk, tm, tk), cdt),       # layer-1 activation cache
            ],
        ),
        compiler_params=pltpu.CompilerParams(
            # j must stay "arbitrary": the h_cache is filled at j==0 and reused
            # for j>0, so the whole j loop must run on one core.  The batch
            # axis stays "parallel" for megacore sharding.
            dimension_semantics=("parallel", "arbitrary", "arbitrary"),
            vmem_limit_bytes=int(vmem_limit),
        ),
        cost_estimate=pl.CostEstimate(
            flops=int(flops), transcendentals=0,
            bytes_accessed=int(bytes_accessed)),
    )(x_pad, w1t, b1r, w2t, b2r)


# ----------------------------------------------------------------------------
# One-time operand preparation (hoisted out of the forward path)
# ----------------------------------------------------------------------------
def _prep_operands(w1, b1, w2, b2, compute_dtype):
    """Transpose to (in, out) layout, cast weights, keep biases f32, pad to 128.

    Zero padding is semantics-preserving: padded IN columns of x are zero,
    padded hidden units get b1=0 -> ReLU(0)=0 and zero w2 rows, padded OUT
    columns get zero w2 columns / b2 and are sliced off by the wrapper.
    """
    H, IN = w1.shape
    OUT = w2.shape[0]
    in_pad = _round_up(IN, LANE)
    h_pad = _round_up(H, LANE)
    out_pad = _round_up(OUT, LANE)
    w1t = _pad_to(w1.T.astype(compute_dtype), (in_pad, h_pad))    # (IN_pad, H_pad)
    b1r = _pad_to(b1.astype(jnp.float32).reshape(1, -1), (1, h_pad))
    w2t = _pad_to(w2.T.astype(compute_dtype), (h_pad, out_pad))   # (H_pad, OUT_pad)
    b2r = _pad_to(b2.astype(jnp.float32).reshape(1, -1), (1, out_pad))
    return w1t, b1r, w2t, b2r


def mlp_forward_prepared(x, w1t, b1r, w2t, b2r, *, out_features, tn, tk,
                         tm_cap, compute_dtype, vmem_limit):
    """Per-call path: pad batch/IN of x, run the fused kernel, slice output."""
    B = x.shape[0]
    sub = SUBLANE * 4 // jnp.dtype(compute_dtype).itemsize    # 8 f32 / 16 bf16
    tm = _pick_tm(B, tm_cap, sub)
    b_pad = _round_up(B, tm)
    in_pad = w1t.shape[0]
    x_pad = _pad_to(x.astype(compute_dtype), (b_pad, in_pad))
    out_pad = _fused_mlp_pallas(x_pad, w1t, b1r, w2t, b2r,
                                tm=tm, tn=tn, tk=tk, out_dtype=x.dtype,
                                vmem_limit=vmem_limit)
    return out_pad[:B, :out_features]


def mlp_forward_pallas(x, w1, b1, w2, b2, compute_dtype=jnp.float32):
    """Standalone convenience wrapper (prep + forward in one call)."""
    H, IN = w1.shape
    OUT = w2.shape[0]
    in_pad, h_pad, out_pad = (_round_up(d, LANE) for d in (IN, H, OUT))
    budget = _vmem_budget_bytes()
    itemsize = jnp.dtype(compute_dtype).itemsize
    caps = (512, 256, 1024) if budget >= 90 * 1024 * 1024 else (256, 256, 512)
    tm_cap, tn, tk = _select_tiles(in_pad, h_pad, out_pad, itemsize,
                                   budget, *caps)
    w1t, b1r, w2t, b2r = _prep_operands(w1, b1, w2, b2, compute_dtype)
    return mlp_forward_prepared(x, w1t, b1r, w2t, b2r, out_features=OUT,
                                tn=tn, tk=tk, tm_cap=tm_cap,
                                compute_dtype=compute_dtype, vmem_limit=budget)


# ----------------------------------------------------------------------------
# FSDP (ZeRO-1) wrapper — mirrors RatexFullyShardedDataParallel
# ----------------------------------------------------------------------------
class RatexFSDP:
    """JAX port of RatexFullyShardedDataParallel.

    Holds full params (used by forward) plus this rank's ZeRO-1 shards
    (pad-to-multiple-of-world_size, chunk, take rank's slice) exactly as
    _shard_tensor does.  forward() delegates to the wrapped module — here the
    fused Pallas MLP kernel — with all weight-layout work hoisted to __init__.
    """

    def __init__(self, params, rank=0, world_size=4,
                 compute_dtype=jnp.bfloat16):
        self.rank = rank
        self.world_size = world_size
        self.params = params  # full (unsharded, PyTorch-layout) parameters
        # ZeRO-1 shards of the original parameters (optimizer state only).
        self.sharded_params = [self._shard_tensor(p) for p in params.values()]
        # TODO(synk): optimizer construction and step() (all_reduce of grads +
        # all_gather of updated shards) are training-time collectives, not part
        # of the forward pass, and are not reproduced here.

        H, IN = params["w1"].shape
        OUT = params["w2"].shape[0]
        in_pad = _round_up(IN, LANE)
        h_pad = _round_up(H, LANE)
        out_pad = _round_up(OUT, LANE)

        budget = _vmem_budget_bytes()
        itemsize = jnp.dtype(compute_dtype).itemsize
        if budget >= 90 * 1024 * 1024:      # v5e / v6e: 128 MiB physical VMEM
            tm_cap, tn_cap, tk_cap = 512, 256, 1024
        else:                               # v7x: 64 MiB physical VMEM
            tm_cap, tn_cap, tk_cap = 256, 256, 512
        tm_cap, tn, tk = _select_tiles(in_pad, h_pad, out_pad, itemsize,
                                       budget, tm_cap, tn_cap, tk_cap)
        # TODO(synk): for very large IN (IN_pad * tk approaching the VMEM
        # budget) an IN reduction tile would be needed; full-IN-per-block is
        # kept since typical MLP widths fit comfortably after the budget check.

        self._prepped = _prep_operands(params["w1"], params["b1"],
                                       params["w2"], params["b2"],
                                       compute_dtype)
        self._jit_forward = jax.jit(functools.partial(
            mlp_forward_prepared,
            out_features=OUT, tn=tn, tk=tk, tm_cap=tm_cap,
            compute_dtype=compute_dtype, vmem_limit=budget))

    def _shard_tensor(self, tensor):
        flat = tensor.reshape(-1)
        n = flat.shape[0]
        if n % self.world_size != 0:
            pad = self.world_size - n % self.world_size
            flat = jnp.pad(flat, (0, pad))
        chunk = flat.shape[0] // self.world_size
        return flat[self.rank * chunk:(self.rank + 1) * chunk]

    def sharded_parameters(self):
        yield from self.sharded_params

    def forward(self, x):
        w1t, b1r, w2t, b2r = self._prepped
        return self._jit_forward(x, w1t, b1r, w2t, b2r)

    __call__ = forward


# ----------------------------------------------------------------------------
# Reference (plain JAX) for correctness check
# ----------------------------------------------------------------------------
def _reference_forward(x, w1, b1, w2, b2):
    h = jnp.maximum(x @ w1.T + b1, 0.0)
    return h @ w2.T + b2


if __name__ == "__main__":
    BATCH, IN, HIDDEN, OUT = 8, 32, 64, 16

    key = jax.random.PRNGKey(0)
    k_x, k_w1, k_b1, k_w2, k_b2 = jax.random.split(key, 5)

    x = jax.random.normal(k_x, (BATCH, IN), dtype=jnp.float32)
    params = {
        "w1": jax.random.normal(k_w1, (HIDDEN, IN), dtype=jnp.float32) * 0.1,
        "b1": jax.random.normal(k_b1, (HIDDEN,), dtype=jnp.float32) * 0.1,
        "w2": jax.random.normal(k_w2, (OUT, HIDDEN), dtype=jnp.float32) * 0.1,
        "b2": jax.random.normal(k_b2, (OUT,), dtype=jnp.float32) * 0.1,
    }

    ref = _reference_forward(x, params["w1"], params["b1"],
                             params["w2"], params["b2"])

    # f32 compute path: tight match vs reference.
    fsdp = RatexFSDP(params, rank=0, world_size=4,
                     compute_dtype=jnp.float32)
    out = jax.block_until_ready(fsdp(x))
    assert out.shape == (BATCH, OUT)
    assert jnp.allclose(out, ref, atol=1e-4, rtol=1e-4), "f32 mismatch"

    # bf16 MXU compute path (default / production on v6e/v7x), f32 accumulation.
    fsdp_bf16 = RatexFSDP(params, rank=0, world_size=4,
                          compute_dtype=jnp.bfloat16)
    out_bf16 = jax.block_until_ready(fsdp_bf16(x))
    assert out_bf16.shape == (BATCH, OUT)
    assert jnp.allclose(out_bf16.astype(jnp.float32), ref,
                        atol=5e-2, rtol=5e-2), "bf16 mismatch"

    # Unaligned shapes exercise the pad-to-128 / batch-padding paths.
    B2, IN2, H2, OUT2 = 5, 33, 70, 9
    k_x2, k_w3, k_b3, k_w4, k_b4 = jax.random.split(jax.random.PRNGKey(1), 5)
    x2 = jax.random.normal(k_x2, (B2, IN2), dtype=jnp.float32)
    w3 = jax.random.normal(k_w3, (H2, IN2), dtype=jnp.float32) * 0.1
    b3 = jax.random.normal(k_b3, (H2,), dtype=jnp.float32) * 0.1
    w4 = jax.random.normal(k_w4, (OUT2, H2), dtype=jnp.float32) * 0.1
    b4 = jax.random.normal(k_b4, (OUT2,), dtype=jnp.float32) * 0.1
    ref2 = _reference_forward(x2, w3, b3, w4, b4)
    out2 = jax.block_until_ready(
        mlp_forward_pallas(x2, w3, b3, w4, b4, compute_dtype=jnp.float32))
    assert out2.shape == (B2, OUT2)
    assert jnp.allclose(out2, ref2, atol=1e-4, rtol=1e-4), "unaligned mismatch"

    # Sanity: ZeRO-1 shards exist and cover each padded parameter exactly.
    for full, shard in zip(params.values(), fsdp.sharded_parameters()):
        n = full.size
        padded = n + (-n) % fsdp.world_size
        assert shard.size == padded // fsdp.world_size

    print("KERNEL_OK")
</pallas_src>

<mosaic_0001>
module attributes {stable_mosaic.version = 11 : i64} {
  func.func @_mlp_fused_kernel(%arg0: i32, %arg1: i32, %arg2: i32, %arg3: memref<8x128xf32, #tpu.memory_space<vmem>>, %arg4: memref<128x128xf32, #tpu.memory_space<vmem>>, %arg5: memref<1x128xf32, #tpu.memory_space<vmem>>, %arg6: memref<128x128xf32, #tpu.memory_space<vmem>>, %arg7: memref<1x128xf32, #tpu.memory_space<vmem>>, %arg8: memref<8x128xf32, #tpu.memory_space<vmem>>, %arg9: memref<8x128xf32, #tpu.memory_space<vmem>>, %arg10: memref<1x8x128xf32, #tpu.memory_space<vmem>>) attributes {dimension_semantics = [#tpu.dimension_semantics<parallel>, #tpu.dimension_semantics<arbitrary>, #tpu.dimension_semantics<arbitrary>], iteration_bounds = array<i64: 1, 1, 1>, scalar_prefetch = 0 : i64, scratch_operands = 2 : i64, tpu.core_type = #tpu.core_type<tc>, window_params = [{transform_indices = @transform_0, window_bounds = array<i64: 8, 128>}, {transform_indices = @transform_1, window_bounds = array<i64: 128, 128>}, {transform_indices = @transform_2, window_bounds = array<i64: 1, 128>}, {transform_indices = @transform_3, window_bounds = array<i64: 128, 128>}, {transform_indices = @transform_4, window_bounds = array<i64: 1, 128>}, {transform_indices = @transform_5, window_bounds = array<i64: 8, 128>}]} {
    %c0_i32 = arith.constant 0 : i32
    %0 = arith.cmpi eq, %arg2, %c0_i32 : i32
    %1 = arith.extui %0 : i1 to i32
    %c0_i32_0 = arith.constant 0 : i32
    %2 = arith.cmpi ne, %1, %c0_i32_0 : i32
    scf.if %2 {
      %cst_12 = arith.constant 0.000000e+00 : f32
      %17 = vector.broadcast %cst_12 : f32 to vector<8x128xf32>
      %c0_13 = arith.constant 0 : index
      %c0_14 = arith.constant 0 : index
      %18 = vector.load %arg9[%c0_13, %c0_14] : memref<8x128xf32, #tpu.memory_space<vmem>>, vector<8x128xf32>
      tpu.vector_store %arg9[%c0_13, %c0_14], %17 {strides = array<i32>} : memref<8x128xf32, #tpu.memory_space<vmem>>, vector<8x128xf32>,
    } else {
    }
    %c0_i32_1 = arith.constant 0 : i32
    %3 = arith.cmpi eq, %arg1, %c0_i32_1 : i32
    %4 = arith.extui %3 : i1 to i32
    %c0_i32_2 = arith.constant 0 : i32
    %5 = arith.cmpi ne, %4, %c0_i32_2 : i32
    scf.if %5 {
      %c0_12 = arith.constant 0 : index
      %c0_13 = arith.constant 0 : index
      %17 = vector.load %arg3[%c0_12, %c0_13] : memref<8x128xf32, #tpu.memory_space<vmem>>, vector<8x128xf32>
      %c0_14 = arith.constant 0 : index
      %c0_15 = arith.constant 0 : index
      %18 = vector.load %arg4[%c0_14, %c0_15] : memref<128x128xf32, #tpu.memory_space<vmem>>, vector<128x128xf32>
      %cst_16 = arith.constant dense<0.000000e+00> : vector<8x128xf32>
      %19 = tpu.matmul %17, %18, %cst_16 {dimension_numbers = #tpu.dot_dimension_numbers<[1], [0], [0], [1], [0, 0, 1, 1], [], []>} : vector<8x128xf32>, vector<128x128xf32>, vector<8x128xf32> -> vector<8x128xf32>
      %c0_17 = arith.constant 0 : index
      %c0_18 = arith.constant 0 : index
      %20 = vector.load %arg5[%c0_17, %c0_18] : memref<1x128xf32, #tpu.memory_space<vmem>>, vector<1x128xf32>
      %21 = vector.broadcast %20 : vector<1x128xf32> to vector<8x128xf32>
      %22 = arith.addf %19, %21 : vector<8x128xf32>
      %cst_19 = arith.constant 0.000000e+00 : f32
      %23 = vector.broadcast %cst_19 : f32 to vector<8x128xf32>
      %24 = arith.maximumf %22, %23 : vector<8x128xf32>
      %25 = arith.index_cast %arg2 : i32 to index
      %c0_20 = arith.constant 0 : index
      %c0_21 = arith.constant 0 : index
      %26 = vector.load %arg10[%25, %c0_20, %c0_21] : memref<1x8x128xf32, #tpu.memory_space<vmem>>, vector<1x8x128xf32>
      %27 = vector.shape_cast %26 : vector<1x8x128xf32> to vector<8x128xf32>
      %28 = vector.shape_cast %24 : vector<8x128xf32> to vector<1x8x128xf32>
      tpu.vector_store %arg10[%25, %c0_20, %c0_21], %28 {strides = array<i32>} : memref<1x8x128xf32, #tpu.memory_space<vmem>>, vector<1x8x128xf32>,
    } else {
    }
    %c0 = arith.constant 0 : index
    %c0_3 = arith.constant 0 : index
    %6 = vector.load %arg9[%c0, %c0_3] : memref<8x128xf32, #tpu.memory_space<vmem>>, vector<8x128xf32>
    %7 = arith.index_cast %arg2 : i32 to index
    %c0_4 = arith.constant 0 : index
    %c0_5 = arith.constant 0 : index
    %8 = vector.load %arg10[%7, %c0_4, %c0_5] : memref<1x8x128xf32, #tpu.memory_space<vmem>>, vector<1x8x128xf32>
    %9 = vector.shape_cast %8 : vector<1x8x128xf32> to vector<8x128xf32>
    %c0_6 = arith.constant 0 : index
    %c0_7 = arith.constant 0 : index
    %10 = vector.load %arg6[%c0_6, %c0_7] : memref<128x128xf32, #tpu.memory_space<vmem>>, vector<128x128xf32>
    %cst = arith.constant dense<0.000000e+00> : vector<8x128xf32>
    %11 = tpu.matmul %9, %10, %cst {dimension_numbers = #tpu.dot_dimension_numbers<[1], [0], [0], [1], [0, 0, 1, 1], [], []>} : vector<8x128xf32>, vector<128x128xf32>, vector<8x128xf32> -> vector<8x128xf32>
    %12 = arith.addf %6, %11 : vector<8x128xf32>
    %c0_8 = arith.constant 0 : index
    %c0_9 = arith.constant 0 : index
    %13 = vector.load %arg9[%c0_8, %c0_9] : memref<8x128xf32, #tpu.memory_space<vmem>>, vector<8x128xf32>
    tpu.vector_store %arg9[%c0_8, %c0_9], %12 {strides = array<i32>} : memref<8x128xf32, #tpu.memory_space<vmem>>, vector<8x128xf32>,
    %c0_i32_10 = arith.constant 0 : i32
    %14 = arith.cmpi eq, %arg2, %c0_i32_10 : i32
    %15 = arith.extui %14 : i1 to i32
    %c0_i32_11 = arith.constant 0 : i32
    %16 = arith.cmpi ne, %15, %c0_i32_11 : i32
    scf.if %16 {
      %c0_12 = arith.constant 0 : index
      %c0_13 = arith.constant 0 : index
      %17 = vector.load %arg9[%c0_12, %c0_13] : memref<8x128xf32, #tpu.memory_space<vmem>>, vector<8x128xf32>
      %c0_14 = arith.constant 0 : index
      %c0_15 = arith.constant 0 : index
      %18 = vector.load %arg7[%c0_14, %c0_15] : memref<1x128xf32, #tpu.memory_space<vmem>>, vector<1x128xf32>
      %19 = vector.broadcast %18 : vector<1x128xf32> to vector<8x128xf32>
      %20 = arith.addf %17, %19 : vector<8x128xf32>
      %c0_16 = arith.constant 0 : index
      %c0_17 = arith.constant 0 : index
      %21 = vector.load %arg8[%c0_16, %c0_17] : memref<8x128xf32, #tpu.memory_space<vmem>>, vector<8x128xf32>
      tpu.vector_store %arg8[%c0_16, %c0_17], %20 {strides = array<i32>} : memref<8x128xf32, #tpu.memory_space<vmem>>, vector<8x128xf32>,
    } else {
    }
    return
  }
  func.func @transform_0(%arg0: i32, %arg1: i32, %arg2: i32) -> (i32, i32) {
    %c0_i32 = arith.constant 0 : i32
    %c0_i32_0 = arith.constant 0 : i32
    return %arg0, %c0_i32 : i32, i32
  }
  func.func @transform_1(%arg0: i32, %arg1: i32, %arg2: i32) -> (i32, i32) {
    %c0_i32 = arith.constant 0 : i32
    %0 = arith.cmpi eq, %arg1, %c0_i32 : i32
    %c0_i32_0 = arith.constant 0 : i32
    %1 = arith.select %0, %arg2, %c0_i32_0 : i32
    %c0_i32_1 = arith.constant 0 : i32
    %c0_i32_2 = arith.constant 0 : i32
    return %c0_i32_1, %1 : i32, i32
  }
  func.func @transform_2(%arg0: i32, %arg1: i32, %arg2: i32) -> (i32, i32) {
    %c0_i32 = arith.constant 0 : i32
    %0 = arith.cmpi eq, %arg1, %c0_i32 : i32
    %c0_i32_0 = arith.constant 0 : i32
    %1 = arith.select %0, %arg2, %c0_i32_0 : i32
    %c0_i32_1 = arith.constant 0 : i32
    %c0_i32_2 = arith.constant 0 : i32
    return %c0_i32_1, %1 : i32, i32
  }
  func.func @transform_3(%arg0: i32, %arg1: i32, %arg2: i32) -> (i32, i32) {
    %c0_i32 = arith.constant 0 : i32
    return %arg2, %arg1 : i32, i32
  }
  func.func @transform_4(%arg0: i32, %arg1: i32, %arg2: i32) -> (i32, i32) {
    %c0_i32 = arith.constant 0 : i32
    %c0_i32_0 = arith.constant 0 : i32
    return %c0_i32, %arg1 : i32, i32
  }
  func.func @transform_5(%arg0: i32, %arg1: i32, %arg2: i32) -> (i32, i32) {
    %c0_i32 = arith.constant 0 : i32
    return %arg0, %arg1 : i32, i32
  }
}

</mosaic_0001>

<bundles_post_ra>
// kernel: mlp_forward_prepared.1
= control target key start
LH: loop header
LB: loop body
LE: loop exit
PB: predicated region body
PF: predicated region fallthrough
CT: control target
= control target key end

     0   :  { %10 = vsyncpa [#allocation5], 0  ;;  %s345_s0 = inlined_call_operand.vmem [shape: f32[8,128], index: 0, kind: input, shape index: {}]   ;;  %s346_s1 = inlined_call_operand.hbm [shape: f32[128,128], index: 1, kind: input, shape index: {}]   ;;  %s347_s2 = inlined_call_operand.vmem [shape: f32[1,128], index: 2, kind: input, shape index: {}]   ;;  %s348_s3 = inlined_call_operand.hbm [shape: f32[128,128], index: 3, kind: input, shape index: {}]   ;;  %s349_s4 = inlined_call_operand.vmem [shape: f32[1,128], index: 4, kind: input, shape index: {}]   ;;  %s350_s5 = inlined_call_operand.hbm [shape: f32[8,128], index: 5, kind: output, shape index: {}]  }
   0x1   :  { %11 = vsyncpa [#allocation8], 0 }
   0x2   :  { %12 = vsyncpa [#allocation6], 0  ;;  %s23_s20 = sshll.u32 %s346_s1, 4  ;;  %s292_s21 = smov [#allocation4]   ;;  %s24_s20 = int_to_ptr.hbm [resolvable:$true] %s23_s20 }
   0x3   :  { %s25_s22 = sshll.u32 %s292_s21, 4  ;;  %s45_s25 = sshll.u32 %s348_s3, 4  ;;  %s26_s22 = int_to_ptr.vmem [resolvable:$true] %s25_s22  ;;  %s46_s25 = int_to_ptr.hbm [resolvable:$true] %s45_s25 }
   0x4   :  { %s293_s26 = smov 128   ;;  %s294_s27 = smov 8  }
   0x5   :  { %31 = dma.hbm_to_vmem [thread:$0]  %s24_s20, 2048, %s26_s22, [#allocation5], %s293_s26, %s293_s26, %s294_s27  }
   0x6   :  { %s295_s28 = smov [#allocation7]  }
   0x7   :  { %s47_s29 = sshll.u32 %s295_s28, 4  ;;  %s48_s29 = int_to_ptr.vmem [resolvable:$true] %s47_s29 }
   0x8   :  { %53 = dma.hbm_to_vmem [thread:$0]  %s46_s25, 2048, %s48_s29, [#allocation8], %s293_s26, %s293_s26, %s294_s27  }
   0x9   :  { %286 = dma.done.wait [#allocation5], 2048  }
   0xa   :  { %287 = vsyncadd [#allocation5], 4294965248 }
   0xb   :  { %288 = dma.done.wait [#allocation8], 2048  }
   0xc   :  { %289 = vsyncadd [#allocation8], 4294965248  ;;  %v103_v0 = vld [vmem:[#allocation4 + $0x78] sm:$0xff]  ;;  %v102_v1 = vld [vmem:[#allocation4 + $0x70] sm:$0xff]  ;;  %s191_s12 = sshll.u32 %s350_s5, 4  ;;  %s192_s12 = int_to_ptr.hbm [resolvable:$true] %s191_s12 }
   0xd   :  { %108 = vmatpush.msra.mxu0 %v103_v0  ;;  %v101_v2 = vld [vmem:[#allocation4 + $0x68] sm:$0xff]  ;;  %v100_v3 = vld [vmem:[#allocation4 + $0x60] sm:$0xff]  ;;  %v151_v4 = vld [vmem:[#allocation7 + $0x78] sm:$0xff] }
   0xe   :  { %v99_v5 = vld [vmem:[#allocation4 + $0x58] sm:$0xff]  ;;  %152 = vmatpush.msra.mxu1 %v151_v4  ;;  %v150_v6 = vld [vmem:[#allocation7 + $0x70] sm:$0xff]  ;;  %v149_v7 = vld [vmem:[#allocation7 + $0x68] sm:$0xff] }
   0xf   :  { %109 = vmatpush.msra.mxu0 %v102_v1  ;;  %v98_v8 = vld [vmem:[#allocation4 + $0x50] sm:$0xff]  ;;  %v148_v9 = vld [vmem:[#allocation7 + $0x60] sm:$0xff]  ;;  %v97_v10 = vld [vmem:[#allocation4 + $0x48] sm:$0xff] }
  0x10   :  { %153 = vmatpush.msra.mxu1 %v150_v6  ;;  %v147_v11 = vld [vmem:[#allocation7 + $0x58] sm:$0xff]  ;;  %v96_v12 = vld [vmem:[#allocation4 + $0x40] sm:$0xff]  ;;  %v146_v13 = vld [vmem:[#allocation7 + $0x50] sm:$0xff] }
  0x11   :  { %110 = vmatpush.msra.mxu0 %v101_v2  ;;  %v95_v14 = vld [vmem:[#allocation4 + $0x38] sm:$0xff]  ;;  %v145_v15 = vld [vmem:[#allocation7 + $0x48] sm:$0xff]  ;;  %v94_v16 = vld [vmem:[#allocation4 + $0x30] sm:$0xff] }
  0x12   :  { %154 = vmatpush.msra.mxu1 %v149_v7  ;;  %v144_v17 = vld [vmem:[#allocation7 + $0x40] sm:$0xff]  ;;  %v93_v18 = vld [vmem:[#allocation4 + $0x28] sm:$0xff]  ;;  %v143_v19 = vld [vmem:[#allocation7 + $0x38] sm:$0xff] }
  0x13   :  { %111 = vmatpush.msra.mxu0 %v100_v3  ;;  %v92_v20 = vld [vmem:[#allocation4 + $0x20] sm:$0xff]  ;;  %v142_v21 = vld [vmem:[#allocation7 + $0x30] sm:$0xff]  ;;  %v91_v22 = vld [vmem:[#allocation4 + $0x18] sm:$0xff] }
  0x14   :  { %155 = vmatpush.msra.mxu1 %v148_v9  ;;  %v141_v23 = vld [vmem:[#allocation7 + $0x28] sm:$0xff]  ;;  %v90_v24 = vld [vmem:[#allocation4 + $0x10] sm:$0xff]  ;;  %v140_v25 = vld [vmem:[#allocation7 + $0x20] sm:$0xff] }
  0x15   :  { %112 = vmatpush.msra.mxu0 %v99_v5  ;;  %v89_v26 = vld [vmem:[#allocation4 + $0x8] sm:$0xff]  ;;  %v139_v27 = vld [vmem:[#allocation7 + $0x18] sm:$0xff]  ;;  %v88_v28 = vld [vmem:[#allocation4] sm:$0xff] }
  0x16   :  { %156 = vmatpush.msra.mxu1 %v147_v11  ;;  %v87_v29 = vld [vmem:[%s345_s0] sm:$0xff]  ;;  %v138_v30 = vld [vmem:[#allocation7 + $0x10] sm:$0xff]  ;;  %v137_v31 = vld [vmem:[#allocation7 + $0x8] sm:$0xff]  ;;  %s296_s0 = smov [#allocation9]  }
  0x17   :  { %113 = vmatpush.msra.mxu0 %v98_v8  ;;  %v136_v32 = vld [vmem:[#allocation7] sm:$0xff]  ;;  %s189_s9 = sshll.u32 %s296_s0, 4  ;;  %s190_s9 = int_to_ptr.vmem [resolvable:$true] %s189_s9 }
  0x18   :  { %157 = vmatpush.msra.mxu1 %v146_v13  ;;  %v212_v33 = vld [vmem:[%s347_s2] ss:$0 sm:$0xff] }
  0x19   :  { %114 = vmatpush.msra.mxu0 %v97_v10  ;;  %v213_v37 = vld [vmem:[%s349_s4] ss:$0 sm:$0xff] }
  0x1a   :  { %158 = vmatpush.msra.mxu1 %v145_v15 }
  0x1b   :  { %115 = vmatpush.msra.mxu0 %v96_v12 }
  0x1c   :  { %159 = vmatpush.msra.mxu1 %v144_v17 }
  0x1d   :  { %116 = vmatpush.msra.mxu0 %v95_v14 }
  0x1e   :  { %160 = vmatpush.msra.mxu1 %v143_v19 }
  0x1f   :  { %117 = vmatpush.msra.mxu0 %v94_v16 }
  0x20   :  { %161 = vmatpush.msra.mxu1 %v142_v21 }
  0x21   :  { %118 = vmatpush.msra.mxu0 %v93_v18 }
  0x22   :  { %162 = vmatpush.msra.mxu1 %v141_v23 }
  0x23   :  { %119 = vmatpush.msra.mxu0 %v92_v20 }
  0x24   :  { %163 = vmatpush.msra.mxu1 %v140_v25 }
  0x25   :  { %120 = vmatpush.msra.mxu0 %v91_v22 }
  0x26   :  { %164 = vmatpush.msra.mxu1 %v139_v27 }
  0x27   :  { %121 = vmatpush.msra.mxu0 %v90_v24 }
  0x28   :  { %165 = vmatpush.msra.mxu1 %v138_v30 }
  0x29   :  { %122 = vmatpush.msra.mxu0 %v89_v26 }
  0x2a   :  { %166 = vmatpush.msra.mxu1 %v137_v31 }
  0x2b   :  { %123 = vmatpush.msra.mxu0 %v88_v28 }
  0x2c   :  { %124 = vmatmul.f32.vlgmr.msra.gmra.mxu0 %v87_v29  ;;  %167 = vmatpush.msra.mxu1 %v136_v32 }
  0xa9   :  { %v125_v34 = vpop.f32.mrf.mxu0 }
  0xaa   :  { %v126_v35 = vadd.f32 %v212_v33, %v125_v34 }
  0xac   :  { %v128_v36 = vmax.f32 %v126_v35, 0.0 }
  0xae   :  { %168 = vmatmul.f32.vlgmr.msra.gmra.mxu1 %v128_v36 }
 0x12b   :  { %v169_v38 = vpop.f32.mrf.mxu1 }
 0x12c   :  { %v182_v39 = vadd.f32 %v213_v37, %v169_v38 }
 0x12e   :  { %183 = vst [vmem:[#allocation9] sm:$0xff] %v182_v39 }
 0x12f   :  { %194 = dma.vmem_to_hbm [thread:$0]  %s190_s9, 128, %s192_s12, [#allocation6]  }
 0x130   :  { %290 = dma.done.wait [#allocation6], 128  }
 0x131   :  { %291 = vsyncadd [#allocation6], 4294967168 }
 0x132   :  { %199 = vsyncpa [#allocation5], 1 }
 0x133   :  { %200 = vsyncpa [#allocation8], 1 }
 0x134   :  { %201 = vsyncpa [#allocation6], 1 }

</bundles_post_ra>
